<compile_context>
chip_gen: v7x
topology: tpu7x:2x2x1
jax: 0.10.0
libtpu: 0.0.40
codegen_flags: <defaults>
</compile_context>

<pallas_src>
from functools import partial

import jax
import jax.numpy as jnp
from jax.experimental import pallas as pl
from jax.experimental.pallas import tpu as pltpu

_MIB = 1024 * 1024


def _identity_copy_kernel(x_ref, o_ref):
    # Pure pass-through: copy the current VMEM tile to the (aliased) output tile.
    o_ref[...] = x_ref[...]


def _pick_block_bytes():
    """Generation-aware block size for the explicit copy kernel.

    4 MiB is safe on every generation once vmem_limit_bytes covers the
    double-buffered in+out footprint (4x block).  On v7x-class parts
    (64 MiB physical VMEM, ~3.2 TB/s HBM) a 4 MiB step is overhead-dominated
    (~0.35 us/step grid overhead), so bump to 8 MiB there.
    """
    block = 4 * _MIB
    try:
        info = pltpu.get_tpu_info()
        vmem = int(getattr(info, "vmem_capacity_bytes", 0) or 0)
        if 0 < vmem <= 64 * _MIB:  # v7x-class: small VMEM, very fast HBM
            block = 8 * _MIB
    except Exception:
        pass  # unknown part: keep the conservative default
    return block


def _choose_lane_width(total):
    """Largest multiple of 128 (<= 8192) dividing the element count, preferring
    a split whose row count is a multiple of 8 (clean (8,128) tiles, no
    partial blocks)."""
    best = None
    for cand in (8192, 4096, 2048, 1024, 512, 256, 128):
        if total % cand == 0:
            if best is None:
                best = cand
            if (total // cand) % 8 == 0:
                return cand
    return best


def _choose_tile_rows(rows, lane, itemsize, block_bytes):
    """Row tile that (a) keeps one block <= block_bytes and (b) is a multiple
    of 8 or equal to the full row count, so the (8,128) block-shape rule holds
    and the pipeline never falls back to a single full-array block."""
    max_rows = max(1, block_bytes // (lane * itemsize))
    if rows <= max_rows:
        return rows  # whole slab fits in one block
    t = (max_rows // 8) * 8
    return max(t, 8)  # >= 8; pl.cdiv grid handles a partial last tile


@partial(jax.jit, donate_argnums=(0,))
def _pallas_identity_copy(x):
    orig_shape = x.shape
    total = x.size
    itemsize = jnp.dtype(x.dtype).itemsize

    lane = _choose_lane_width(total)  # caller guarantees total % 128 == 0
    rows = total // lane
    block_bytes = _pick_block_bytes()
    tile_rows = _choose_tile_rows(rows, lane, itemsize, block_bytes)
    grid = (pl.cdiv(rows, tile_rows),)

    # Lane-dense slab: last dim is a large multiple of 128 so stores are
    # unmasked full-lane vst.  Reshape inside jit is metadata-only.
    x2 = x.reshape(rows, lane)
    nbytes = total * itemsize

    # Double-buffered input + output = 4x block; add generous headroom.
    vmem_limit = 4 * tile_rows * lane * itemsize + 16 * _MIB

    out2 = pl.pallas_call(
        _identity_copy_kernel,
        out_shape=jax.ShapeDtypeStruct((rows, lane), x.dtype),
        grid=grid,
        in_specs=[pl.BlockSpec((tile_rows, lane), lambda i: (i, 0))],
        out_specs=pl.BlockSpec((tile_rows, lane), lambda i: (i, 0)),
        # With jit-level donation (donate_argnums above) this alias is real:
        # no defensive copy, no second HBM allocation.  The pipeline still
        # streams ~2*nbytes of HBM traffic — which is why the default forward
        # skips the kernel entirely.
        input_output_aliases={0: 0},
        cost_estimate=pl.CostEstimate(
            flops=0, transcendentals=0, bytes_accessed=2 * nbytes
        ),
        compiler_params=pltpu.CompilerParams(
            dimension_semantics=("parallel",),
            vmem_limit_bytes=vmem_limit,
        ),
    )(x2)
    return out2.reshape(orig_shape)


def pass_forward(x):
    """Forward of `Pass`: identity.

    Zero HBM traffic — just return the input.  This is the correct lowering of
    an identity on TPU: any copy kernel would read and write every byte.
    """
    return x


def pass_forward_pallas(x):
    """Identity implemented as an explicit Pallas copy kernel.

    Only use when a materialized pallas_call is required.  NOTE: donates `x`
    (do not reuse `x` after calling this).
    """
    if x.size == 0 or x.size % 128 != 0:
        # No lane-dense tiling possible; the identity needs no data movement.
        return x
    return _pallas_identity_copy(x)


if __name__ == "__main__":
    key = jax.random.PRNGKey(0)
    # Small NCHW-like input consistent with a conv-block pass-through.
    x = jax.random.normal(key, (2, 4, 16, 16), dtype=jnp.float32)
    x_host = jax.device_get(x)  # host reference copy (x is donated below)

    # Default forward: true zero-traffic identity.
    y = pass_forward(x)
    assert y.shape == (2, 4, 16, 16) and y.dtype == jnp.float32
    assert bool(jnp.array_equal(y, x)), "identity (fast path) mismatch"

    # Explicit Pallas kernel path (donates x into the aliased copy kernel).
    y_kernel = pass_forward_pallas(x)
    y_kernel = jax.block_until_ready(y_kernel)

    assert y_kernel.shape == x_host.shape, (y_kernel.shape, x_host.shape)
    assert y_kernel.dtype == x_host.dtype
    assert bool((jax.device_get(y_kernel) == x_host).all()), "identity kernel mismatch"

    print("KERNEL_OK")
</pallas_src>

<mosaic_0001>
module attributes {stable_mosaic.version = 11 : i64} {
  func.func @_identity_copy_kernel(%arg0: i32, %arg1: memref<8x256xf32, #tpu.memory_space<vmem>>, %arg2: memref<8x256xf32, #tpu.memory_space<vmem>>) attributes {dimension_semantics = [#tpu.dimension_semantics<parallel>], iteration_bounds = array<i64: 1>, scalar_prefetch = 0 : i64, scratch_operands = 0 : i64, tpu.core_type = #tpu.core_type<tc>, window_params = [{transform_indices = @transform_0, window_bounds = array<i64: 8, 256>}, {transform_indices = @transform_1, window_bounds = array<i64: 8, 256>}]} {
    %c0 = arith.constant 0 : index
    %c0_0 = arith.constant 0 : index
    %0 = vector.load %arg1[%c0, %c0_0] : memref<8x256xf32, #tpu.memory_space<vmem>>, vector<8x256xf32>
    %c0_1 = arith.constant 0 : index
    %c0_2 = arith.constant 0 : index
    %1 = vector.load %arg2[%c0_1, %c0_2] : memref<8x256xf32, #tpu.memory_space<vmem>>, vector<8x256xf32>
    tpu.vector_store %arg2[%c0_1, %c0_2], %0 {strides = array<i32>} : memref<8x256xf32, #tpu.memory_space<vmem>>, vector<8x256xf32>,
    return
  }
  func.func @transform_0(%arg0: i32) -> (i32, i32) {
    %c0_i32 = arith.constant 0 : i32
    %c0_i32_0 = arith.constant 0 : i32
    return %arg0, %c0_i32 : i32, i32
  }
  func.func @transform_1(%arg0: i32) -> (i32, i32) {
    %c0_i32 = arith.constant 0 : i32
    %c0_i32_0 = arith.constant 0 : i32
    return %arg0, %c0_i32 : i32, i32
  }
}

</mosaic_0001>

<bundles_post_ra>
// kernel: _pallas_identity_copy.1
= control target key start
LH: loop header
LB: loop body
LE: loop exit
PB: predicated region body
PF: predicated region fallthrough
CT: control target
= control target key end

     0   :  { %s38_s0 = inlined_call_operand.vmem [shape: f32[8,256], index: 0, kind: input, shape index: {}, may-alias: {0,1}]   ;;  %s39_s1 = inlined_call_operand.vmem [shape: f32[8,256], index: 1, kind: output, shape index: {}, may-alias: {0,1}]  }
   0x1   :  { %v8_v0 = vld [vmem:[%s38_s0] sm:$0xff]  ;;  %v9_v1 = vld [vmem:[%s38_s0 + $0x8] sm:$0xff] }
   0x2   :  { %10 = vst [vmem:[%s39_s1] sm:$0xff] %v8_v0  ;;  %11 = vst [vmem:[%s39_s1 + $0x8] sm:$0xff] %v9_v1 }

</bundles_post_ra>
